<compile_context>
chip_gen: v7x
topology: tpu7x:2x2x1
jax: 0.10.0
libtpu: 0.0.40
codegen_flags: <defaults>
</compile_context>

<pallas_src>
import jax
import jax.numpy as jnp
from jax.experimental import pallas as pl
from jax.experimental.pallas import tpu as pltpu


def _se_kernel(x_ref, w1t_ref, b1_ref, w2t_ref, o_ref):
    # x_ref / o_ref: (Nb, C, HW) block; weights are small VMEM-resident tiles.
    xv = x_ref[...]                                        # input dtype, no f32 block copy

    # Squeeze: global average pool (1/HW folded into w1t); f32 accumulation.
    pooled = jnp.sum(xv, axis=-1, dtype=jnp.float32)       # (Nb, C)

    # Excite: (BN-folded) 1x1 conv -> ReLU -> 1x1 conv, output dims on lanes.
    hidden = jnp.dot(pooled, w1t_ref[...],
                     preferred_element_type=jnp.float32) + b1_ref[...]   # (Nb, Cr)
    hidden = jnp.maximum(hidden, 0.0)
    logits = jnp.dot(hidden, w2t_ref[...],
                     preferred_element_type=jnp.float32)                 # (Nb, C)

    # hard-sigmoid gate: clamp(a + 3, 0, 6) / 6
    atten = jnp.clip(logits + 3.0, 0.0, 6.0) * (1.0 / 6.0)               # (Nb, C) f32

    # Channel-wise rescale in the input dtype; only the tiny gate is cast.
    gate = atten.astype(o_ref.dtype)[:, :, None]                         # (Nb, C, 1)
    o_ref[...] = xv * gate


def _pick_batch_block(N, per_item_bytes, max_block_bytes):
    """Largest Nb dividing N with Nb*per_item <= budget, keeping >= 2 grid steps."""
    cap = max(1, int(max_block_bytes // max(per_item_bytes, 1)))
    best = 1
    for nb in range(1, N + 1):
        if N % nb != 0 or nb > cap:
            continue
        if N >= 2 and (N // nb) < 2:
            continue  # keep grid length >= 2 so both v7x TensorCores are used
        best = nb
    return best


def se_module(x, w1, w2, *, bn_mean=None, bn_var=None, eps=1e-5,
              max_block_bytes=6 * 1024 * 1024):
    """SEModule forward (eval-mode BatchNorm folded into the first conv).

    x:  (N, C, H, W)          f32 or bf16
    w1: (C//4, C)             first 1x1 conv weight (squeezed to 2-D)
    w2: (C, C//4)             second 1x1 conv weight
    bn_mean / bn_var: running stats over C//4 channels (default zeros / ones,
                      the PyTorch init).
    """
    N, C, H, W = x.shape
    Cr = w1.shape[0]
    HW = H * W

    if bn_mean is None:
        bn_mean = jnp.zeros((Cr,), jnp.float32)
    if bn_var is None:
        bn_var = jnp.ones((Cr,), jnp.float32)

    # Fold eval-mode BN and the GAP 1/HW into the first conv (host-side, O(C^2)).
    inv_std = 1.0 / jnp.sqrt(bn_var.astype(jnp.float32) + eps)              # (Cr,)
    w1t = (w1.astype(jnp.float32) * inv_std[:, None] * (1.0 / HW)).T        # (C, Cr)
    b1 = (-bn_mean.astype(jnp.float32) * inv_std)[None, :]                  # (1, Cr)
    w2t = w2.astype(jnp.float32).T                                          # (Cr, C)

    itemsize = jnp.dtype(x.dtype).itemsize
    Nb = _pick_batch_block(N, C * HW * itemsize, max_block_bytes)
    grid_n = N // Nb

    x3 = x.reshape(N, C, HW)

    # Advisory cost: mem-bound (read + write x once), tiny MLP flops on top.
    flops = 2 * N * C * HW + 4 * N * C * Cr
    bytes_accessed = 2 * N * C * HW * itemsize + 4 * (w1t.size + b1.size + w2t.size)

    out3 = pl.pallas_call(
        _se_kernel,
        out_shape=jax.ShapeDtypeStruct((N, C, HW), x.dtype),
        grid=(grid_n,),
        in_specs=[
            # Nb batch items per grid step; (C, HW) covers the full extents.
            pl.BlockSpec((Nb, C, HW), lambda n: (n, 0, 0)),
            # Small weights / bias: same block every step (not re-DMA'd).
            pl.BlockSpec((C, Cr), lambda n: (0, 0)),
            pl.BlockSpec((1, Cr), lambda n: (0, 0)),
            pl.BlockSpec((Cr, C), lambda n: (0, 0)),
        ],
        out_specs=pl.BlockSpec((Nb, C, HW), lambda n: (n, 0, 0)),
        compiler_params=pltpu.CompilerParams(
            dimension_semantics=("parallel",),
            # 4 x (<=6 MiB) double-buffered blocks + weights < 48 MiB:
            # above v5e's 16 MiB default scoped limit, below v7x's 64 MiB/TC.
            vmem_limit_bytes=48 * 1024 * 1024,
        ),
        cost_estimate=pl.CostEstimate(
            flops=flops, transcendentals=0, bytes_accessed=bytes_accessed),
    )(x3, w1t, b1, w2t)

    return out3.reshape(N, C, H, W)


if __name__ == "__main__":
    key = jax.random.PRNGKey(0)
    kx, kw1, kw2 = jax.random.split(key, 3)

    # Small shapes consistent with the module: N x C x H x W, C//4 hidden.
    N, C, H, W = 2, 8, 16, 16
    Cr = C // 4

    x = jax.random.normal(kx, (N, C, H, W), dtype=jnp.float32)
    w1 = jax.random.normal(kw1, (Cr, C), dtype=jnp.float32) * 0.3
    w2 = jax.random.normal(kw2, (C, Cr), dtype=jnp.float32) * 0.3

    y = jax.block_until_ready(se_module(x, w1, w2))

    # Pure-JAX reference (PyTorch eval-mode BN with default running stats).
    eps = 1e-5
    pooled = jnp.mean(x, axis=(2, 3))                      # (N, C)
    h = (pooled @ w1.T) / jnp.sqrt(1.0 + eps)              # BN: mean=0, var=1
    h = jnp.maximum(h, 0.0)
    logits = h @ w2.T                                      # (N, C)
    atten = jnp.clip(logits + 3.0, 0.0, 6.0) / 6.0
    y_ref = x * atten[:, :, None, None]

    assert jnp.allclose(y, y_ref, atol=1e-5, rtol=1e-5), "mismatch vs reference"
    print("KERNEL_OK")
</pallas_src>

<mosaic_0001>
module attributes {stable_mosaic.version = 11 : i64} {
  func.func @_se_kernel(%arg0: i32, %arg1: memref<1x8x256xf32, #tpu.memory_space<vmem>>, %arg2: memref<8x2xf32, #tpu.memory_space<vmem>>, %arg3: memref<1x2xf32, #tpu.memory_space<vmem>>, %arg4: memref<2x8xf32, #tpu.memory_space<vmem>>, %arg5: memref<1x8x256xf32, #tpu.memory_space<vmem>>) attributes {dimension_semantics = [#tpu.dimension_semantics<parallel>], iteration_bounds = array<i64: 2>, scalar_prefetch = 0 : i64, scratch_operands = 0 : i64, tpu.core_type = #tpu.core_type<tc>, window_params = [{transform_indices = @transform_0, window_bounds = array<i64: 1, 8, 256>}, {pipeline_mode = #tpu.pipeline_mode<synchronous>, transform_indices = @transform_1, window_bounds = array<i64: 8, 2>}, {pipeline_mode = #tpu.pipeline_mode<synchronous>, transform_indices = @transform_2, window_bounds = array<i64: 1, 2>}, {pipeline_mode = #tpu.pipeline_mode<synchronous>, transform_indices = @transform_3, window_bounds = array<i64: 2, 8>}, {transform_indices = @transform_4, window_bounds = array<i64: 1, 8, 256>}]} {
    %c0 = arith.constant 0 : index
    %c0_0 = arith.constant 0 : index
    %c0_1 = arith.constant 0 : index
    %0 = vector.load %arg1[%c0, %c0_0, %c0_1] : memref<1x8x256xf32, #tpu.memory_space<vmem>>, vector<1x8x256xf32>
    %cst = arith.constant dense<0.000000e+00> : vector<1x8xf32>
    %1 = vector.multi_reduction <add>, %0, %cst [2] : vector<1x8x256xf32> to vector<1x8xf32>
    %c0_2 = arith.constant 0 : index
    %c0_3 = arith.constant 0 : index
    %2 = vector.load %arg2[%c0_2, %c0_3] : memref<8x2xf32, #tpu.memory_space<vmem>>, vector<8x2xf32>
    %cst_4 = arith.constant dense<0.000000e+00> : vector<1x2xf32>
    %3 = tpu.matmul %1, %2, %cst_4 {dimension_numbers = #tpu.dot_dimension_numbers<[1], [0], [0], [1], [0, 0, 1, 1], [], []>} : vector<1x8xf32>, vector<8x2xf32>, vector<1x2xf32> -> vector<1x2xf32>
    %c0_5 = arith.constant 0 : index
    %c0_6 = arith.constant 0 : index
    %4 = vector.load %arg3[%c0_5, %c0_6] : memref<1x2xf32, #tpu.memory_space<vmem>>, vector<1x2xf32>
    %5 = arith.addf %3, %4 : vector<1x2xf32>
    %cst_7 = arith.constant 0.000000e+00 : f32
    %6 = vector.broadcast %cst_7 : f32 to vector<1x2xf32>
    %7 = arith.maximumf %5, %6 : vector<1x2xf32>
    %c0_8 = arith.constant 0 : index
    %c0_9 = arith.constant 0 : index
    %8 = vector.load %arg4[%c0_8, %c0_9] : memref<2x8xf32, #tpu.memory_space<vmem>>, vector<2x8xf32>
    %cst_10 = arith.constant dense<0.000000e+00> : vector<1x8xf32>
    %9 = tpu.matmul %7, %8, %cst_10 {dimension_numbers = #tpu.dot_dimension_numbers<[1], [0], [0], [1], [0, 0, 1, 1], [], []>} : vector<1x2xf32>, vector<2x8xf32>, vector<1x8xf32> -> vector<1x8xf32>
    %cst_11 = arith.constant 3.000000e+00 : f32
    %10 = vector.broadcast %cst_11 : f32 to vector<1x8xf32>
    %11 = arith.addf %9, %10 : vector<1x8xf32>
    %cst_12 = arith.constant 0.000000e+00 : f32
    %cst_13 = arith.constant 6.000000e+00 : f32
    %12 = vector.broadcast %cst_12 : f32 to vector<1x8xf32>
    %13 = arith.maximumf %12, %11 : vector<1x8xf32>
    %14 = vector.broadcast %cst_13 : f32 to vector<1x8xf32>
    %15 = arith.minimumf %14, %13 : vector<1x8xf32>
    %cst_14 = arith.constant 0.166666672 : f32
    %16 = vector.broadcast %cst_14 : f32 to vector<1x8xf32>
    %17 = arith.mulf %15, %16 : vector<1x8xf32>
    %18 = vector.shape_cast %17 : vector<1x8xf32> to vector<1x8x1xf32>
    %19 = vector.broadcast %18 : vector<1x8x1xf32> to vector<1x8x256xf32>
    %20 = arith.mulf %0, %19 : vector<1x8x256xf32>
    %c0_15 = arith.constant 0 : index
    %c0_16 = arith.constant 0 : index
    %c0_17 = arith.constant 0 : index
    %21 = vector.load %arg5[%c0_15, %c0_16, %c0_17] : memref<1x8x256xf32, #tpu.memory_space<vmem>>, vector<1x8x256xf32>
    tpu.vector_store %arg5[%c0_15, %c0_16, %c0_17], %20 {strides = array<i32>} : memref<1x8x256xf32, #tpu.memory_space<vmem>>, vector<1x8x256xf32>,
    return
  }
  func.func @transform_0(%arg0: i32) -> (i32, i32, i32) {
    %c0_i32 = arith.constant 0 : i32
    %c0_i32_0 = arith.constant 0 : i32
    %c0_i32_1 = arith.constant 0 : i32
    return %arg0, %c0_i32, %c0_i32_0 : i32, i32, i32
  }
  func.func @transform_1(%arg0: i32) -> (i32, i32) {
    %c0_i32 = arith.constant 0 : i32
    %c0_i32_0 = arith.constant 0 : i32
    %c0_i32_1 = arith.constant 0 : i32
    return %c0_i32, %c0_i32_0 : i32, i32
  }
  func.func @transform_2(%arg0: i32) -> (i32, i32) {
    %c0_i32 = arith.constant 0 : i32
    %c0_i32_0 = arith.constant 0 : i32
    %c0_i32_1 = arith.constant 0 : i32
    return %c0_i32, %c0_i32_0 : i32, i32
  }
  func.func @transform_3(%arg0: i32) -> (i32, i32) {
    %c0_i32 = arith.constant 0 : i32
    %c0_i32_0 = arith.constant 0 : i32
    %c0_i32_1 = arith.constant 0 : i32
    return %c0_i32, %c0_i32_0 : i32, i32
  }
  func.func @transform_4(%arg0: i32) -> (i32, i32, i32) {
    %c0_i32 = arith.constant 0 : i32
    %c0_i32_0 = arith.constant 0 : i32
    %c0_i32_1 = arith.constant 0 : i32
    return %arg0, %c0_i32, %c0_i32_0 : i32, i32, i32
  }
}

</mosaic_0001>

<bundles_post_ra>
// kernel: tpu_custom_call.1
= control target key start
LH: loop header
LB: loop body
LE: loop exit
PB: predicated region body
PF: predicated region fallthrough
CT: control target
= control target key end

     0   :  { %9 = vsyncpa [#allocation3], 0  ;;  %s862_s0 = inlined_call_operand.hbm [shape: f32[2,8,256], index: 0, kind: input, shape index: {}]   ;;  %s863_s1 = inlined_call_operand.vmem [shape: f32[8,2], index: 1, kind: input, shape index: {}]   ;;  %s864_s2 = inlined_call_operand.vmem [shape: f32[1,2], index: 2, kind: input, shape index: {}]   ;;  %s865_s3 = inlined_call_operand.vmem [shape: f32[2,8], index: 3, kind: input, shape index: {}]   ;;  %s866_s4 = inlined_call_operand.hbm [shape: f32[2,8,256], index: 4, kind: output, shape index: {}]  }
   0x1   :  { %11 = vsyncpa [#allocation3 + $0x1], 0 }
   0x2   :  { %12 = vsyncpa [#allocation4], 0 }
   0x3   :  { %14 = vsyncpa [#allocation4 + $0x1], 0  ;;  %s688_s15 = smov 0   ;;  %s690_s16 = smov 0  }
   0x4   :  { %s692_s17 = smov 0   ;;  %s694_s18 = smov 0  }
   0x5 LB: > { %s709_s19 = sadd.s32 4294967295, %s657_s18   ;;  %s480_s20 = sadd.s32 4294967294, %s657_s18   ;;  %s657_s18 = sphi %s694_s18, %s881_s18   ;;  %s653_s17 = sphi %s692_s17, %s880_s17   ;;  %s649_s16 = sphi %s690_s16, %s879_s16   ;;  %s645_s15 = sphi %s688_s15, %s878_s15  }
   0x6   : > { %s713_s21 = sadd.s32 1, %s657_s18   ;;  %s27_s22 = sadd.s32 1, %s653_s17 }
   0x7   : > { %s24_s23 = ssub.s32 %s657_s18, %s713_s21  ;;  %p34_p0 = scmp.ne.s32.totalorder %s653_s17, %s649_s16 }
   0x8   : > { %p25_p1 = scmp.eq.s32.totalorder %s24_s23, 0  ;;  %p35_p2 = scmp.eq.s32.totalorder %s657_s18, 0 }
   0x9   : > { %p40_p3 = scmp.ne.s32.totalorder %s649_s16, %s645_s15  ;;  %p41_p4 = scmp.eq.s32.totalorder %s709_s19, 0 }
   0xa   : > { %s725_s24 = scalar_select %p25_p1, %s653_s17, %s27_s22  }
   0xb   : > { %p727_p5 = por %p35_p2, %p34_p0  ;;  %p731_p6 = por %p41_p4, %p40_p3 }
   0xc   : > { %p127_p7 = scmp.eq.s32.totalorder %s709_s19, 1  ;;  %p133_p8 = scmp.eq.s32.totalorder %s480_s20, 1 }
   0xd   : > { %p525_p10 = scmp.lt.s32.totalorder %s657_s18, 2  ;;  %s162_s29 = sand.u32 1, %s653_s17  }
   0xe   : > { %p738_p11 = por %p127_p7, %p34_p0  ;;  %p742_p12 = por %p133_p8, %p40_p3 }
   0xf   : > { %s497_s30 = sshll.u32 %s657_s18, 8  ;;  %s483_s5 = sshll.u32 %s162_s29, 4 }
  0x10   : > { %s870_s27 = scalar_select %p738_p11, 1, 0 }
  0x11   : > { %s871_s28 = scalar_select %p742_p12, 1, 0 }
  0x12   : > { %s751_s8 = scalar_lea.hbm %s862_s0, %s497_s30  ;;  %s166_s9 = scalar_lea.vmem [#allocation2], %s483_s5 }
  0x13   : > { %s174_s10 = sshll.u32 %s166_s9, 4  ;;  %p755_p13 = pnand %p525_p10, %p727_p5  ;;  %s759_s10 = int_to_ptr.vmem [resolvable:$true] %s174_s10 }
  0x14   : > { %s163_s12 = scalar_lea.sflag [#allocation3], %s162_s29  ;;  %s561_s13 = scalar_lea.hbm %s751_s8, 256 }
  0x15   : > { %p562_p2 = scmp.ne.s32.totalorder %s751_s8, %s561_s13  ;;  %p563_p3 = pneg %p755_p13 }
  0x16   : > { %s566_s22 = scalar_lea.hbm %s862_s0, 512  ;;  %p567_p5 = scmp.lt.u32.totalorder %s751_s8, %s862_s0 }
  0x17   : > { %p564_p4 = pnand %p563_p3, %p562_p2  ;;  %p568_p8 = scmp.lt.u32.totalorder %s566_s22, %s561_s13 }
  0x18   : > { %p570_p9 = scmp.lt.u32.totalorder %s561_s13, %s751_s8 }
  0x19   : > { %p565_p7 = pneg %p564_p4  ;;  %p569_p10 = por %p568_p8, %p567_p5 }
  0x1b   : > { %p571_p0 = por %p570_p9, %p569_p10 }
  0x1d   : > { %p572_p1 = pnand %p571_p0, %p565_p7 }
  0x1f   : > { %575 = shalt.err (!%p572_p1)
}
  0x20   : > { %s576_s29 = scalar_lea.vmem %s759_s10, 256  ;;  %s659_s30 = smov [#allocation2]  }
  0x21   : > { %p577_p2 = scmp.ne.s32.totalorder %s759_s10, %s576_s29  ;;  %s581_s5 = sshll.u32 %s659_s30, 4  ;;  %s582_s5 = int_to_ptr.vmem [resolvable:$false] %s581_s5 }
  0x22   : > { %s583_s6 = scalar_lea.vmem %s582_s5, 512  ;;  %p584_p11 = scmp.lt.s32.totalorder %s759_s10, %s582_s5 }
  0x23   : > { %p579_p4 = pnand %p577_p2, %p563_p3  ;;  %p585_p5 = scmp.lt.s32.totalorder %s583_s6, %s576_s29 }
  0x25   : > { %p580_p12 = pneg %p579_p4  ;;  %p586_p8 = por %p585_p5, %p584_p11 }
  0x27   : > { %p587_p9 = pnand %p586_p8, %p580_p12 }
  0x29   : > { %590 = shalt.err (!%p587_p9)
}
  0x2a   : > { %520 = dma.hbm_to_vmem [thread:$0]  (!%p755_p13), %s751_s8, 256, %s759_s10, %s163_s12  }
  0x2b   : > { %p873_p0 = scmp.lt.s32.totalorder %s657_s18, 3  ;;  %p874_p1 = scmp.ge.s32.totalorder %s657_s18, 1 }
  0x2d   : > { %p180_p3 = pnand %p874_p1, %p873_p0 }
  0x2e   : > { %s793_s7 = sand.u32 (!%p180_p3), 1, %s649_s16  }
  0x2f   : > { %183 = sbr.rel (%p180_p3) target bundleno = 771 (0x303), region = 36  ;;  %s487_s9 = sshll.u32 (!%p180_p3), %s793_s7, 4 }
  0x30   : > { %s186_s13 = scalar_lea.sflag (!%p180_p3), [#allocation3], %s793_s7  ;;  %s189_s11 = scalar_lea.vmem (!%p180_p3), [#allocation2], %s487_s9 }
  0x36   : > { %636 = dma.done.wait (%p731_p6), %s186_s13, 256  }
  0x37   : > { %638 = vsyncadd (%p731_p6), %s186_s13, 4294967040  ;;  %v214_v0 = vld [vmem:[%s189_s11] sm:$0xff]  ;;  %v215_v1 = vld [vmem:[%s189_s11 + $0x8] sm:$0xff]  ;;  %v660_v3 = vmov 0.0   ;;  %vm661_vm0 = vmmov 0   ;;  %v222_v5 = vlaneseq  ;;  %vm228_vm1 = vcmask 64512  }
  0x38   : > { %v216_v2 = vadd.f32 %v215_v1, %v214_v0  ;;  %503 = vmatprep.subr.mxu0 %v660_v3  ;;  %v219_v4 = vld [vmem:[%s863_s1] sm:$0xff]  ;;  %508 = vmatprep.subr.mxu1 %v660_v3  ;;  %vm307_vm2 = vcmask 1041408   ;;  %vm303_vm3 = vcmask 15360   ;;  %s498_s22 = sshll.u32 %s709_s19, 8  ;;  %s213_s23 = scalar_lea.vmem [#allocation5], %s487_s9 }
  0x39   : > { %504 = vmatpush3.msra.mxu0 %v219_v4  ;;  %505 = vmatprep.mubr.msk.f32.mxu0 %vm661_vm0, %v660_v3  ;;  %v223_v6 = vand.u32 127, %v222_v5  ;;  %v225_v7 = vshrl.u32 %v222_v5, 7  ;;  %v302_v11 = vld [vmem:[%s865_s3] sm:$0x3]  ;;  %s410_s25 = sshll.u32 %s213_s23, 4  ;;  %s818_s5 = scalar_lea.hbm %s866_s4, %s498_s22  ;;  %s820_s25 = int_to_ptr.vmem [resolvable:$true] %s410_s25 }
  0x3a   : > { %217 = vadd.xlane.f32.xlu0 %v216_v2  ;;  %510 = vmatprep.mubr.msk.f32.mxu1 %vm661_vm0, %v660_v3  ;;  %v220_v12 = vld [vmem:[%s864_s2] sm:$0x1]  ;;  %s396_s6 = scalar_lea.sflag [#allocation4], %s793_s7  ;;  %s591_s19 = scalar_lea.vmem %s820_s25, 256 }
  0x3b   : > { %v226_v8 = vsub.s32 %v223_v6, %v225_v7  ;;  %509 = vmatpush3.msk.msra.mxu1 %vm307_vm2, %v302_v11  ;;  %v386_v22 = vsub.s32 0, %v225_v7  ;;  %p592_p6 = scmp.ne.s32.totalorder %s820_s25, %s591_s19  ;;  %p875_p11 = scmp.ne.s32.totalorder %s870_s27, 0 }
  0x3c   : > { %s662_s9 = smov [#allocation5]  }
  0x3d   : > { %p593_p12 = pnand %p592_p6, %p875_p11  ;;  %s595_s13 = sshll.u32 %s662_s9, 4  ;;  %s596_s13 = int_to_ptr.vmem [resolvable:$false] %s595_s13 }
  0x3e   : > { %s597_s11 = scalar_lea.vmem %s596_s13, 512  ;;  %p598_p7 = scmp.lt.s32.totalorder %s820_s25, %s596_s13 }
  0x3f   : > { %p594_p13 = pneg %p593_p12  ;;  %p599_p10 = scmp.lt.s32.totalorder %s597_s11, %s591_s19 }
  0x41   : > { %p600_p2 = por %p599_p10, %p598_p7 }
  0x43   : > { %p601_p4 = pnand %p600_p2, %p594_p13 }
  0xc7   : > { %v218_v9 = vpop.xlane.xlu0 %217 }
  0xc8   : > { %v227_v10 = vrot.slane %v218_v9, %v226_v8 }
  0xca   : > { %506 = vmatmul.mubr.msk.f32.vlgmr.msra.gmra.mrb[0].mxu0 %vm228_vm1, %v227_v10 }
 0x19d   : > { %v297_v13 = vpop.f32.mrb[0].mxu0 }
 0x19e   : > { %v298_v14 = vadd.f32 %v297_v13, %v220_v12  ;;  %v507_v15 = vpop.f32.mrb[1].mxu0 }
 0x1a0   : > { %v301_v16 = vmax.f32 %v298_v14, 0.0 }
 0x1a2   : > { %511 = vmatmul.mubr.msk.f32.vlgmr.msra.gmra.mrb[0].mxu1 %vm303_vm3, %v301_v16 }
 0x275   : > { %v377_v17 = vpop.f32.mrb[0].mxu1 }
 0x276   : > { %v378_v18 = vadd.f32 3.0, %v377_v17  ;;  %v512_v19 = vpop.f32.mrb[1].mxu1 }
 0x278   : > { %v381_v20 = vmax.f32 %v378_v18, 0.0 }
 0x27a   : > { %v382_v21 = vmin.f32 %v381_v20, 6.0 }
 0x27c   : > { %v383_v23 = vmul.f32 0.16666667, %v382_v21 }
 0x27e   : > { %v387_v24 = vrot.slane %v383_v23, %v386_v22 }
 0x280   : > { %389 = vbcast.lane.b32.xlu0 %v387_v24, 256 }
 0x2f2   : > { %v390_v25 = vpop.permute.xlu0 %389 }
 0x2f3   : > { %v391_v26 = vmul.f32 %v390_v25, %v214_v0  ;;  %v392_v27 = vmul.f32 %v390_v25, %v215_v1 }
 0x2f5   : > { %393 = vst [vmem:[%s213_s23] sm:$0xff] %v391_v26  ;;  %394 = vst [vmem:[%s213_s23 + $0x8] sm:$0xff] %v392_v27 }
 0x2f6   : > { %604 = shalt.err (!%p601_p4)
}
 0x2f7   : > { %s605_s7 = scalar_lea.hbm %s818_s5, 256  ;;  %s609_s26 = scalar_lea.hbm %s866_s4, 512 }
 0x2f8   : > { %p606_p5 = scmp.ne.s32.totalorder %s818_s5, %s605_s7  ;;  %p610_p0 = scmp.lt.u32.totalorder %s818_s5, %s866_s4 }
 0x2f9   : > { %p611_p1 = scmp.lt.u32.totalorder %s609_s26, %s605_s7  ;;  %p613_p6 = scmp.lt.u32.totalorder %s605_s7, %s818_s5 }
 0x2fa   : > { %p607_p8 = pnand %p606_p5, %p875_p11 }
 0x2fb   : > { %p612_p3 = por %p611_p1, %p610_p0 }
 0x2fc   : > { %p608_p9 = pneg %p607_p8 }
 0x2fd   : > { %p614_p12 = por %p613_p6, %p612_p3 }
 0x2ff   : > { %p615_p13 = pnand %p614_p12, %p608_p9 }
 0x301   : > { %618 = shalt.err (!%p615_p13)
}
 0x302   : > { %515 = dma.vmem_to_hbm [thread:$0]  (%p875_p11), %s820_s25, 256, %s818_s5, %s396_s6  }
 0x303 PF: > { %s422_s20 = sand.u32 1, %s645_s15   ;;  %p876_p7 = scmp.ne.s32.totalorder %s871_s28, 0 }
 0x304   : > { %p877_p10 = scmp.ge.s32.totalorder %s657_s18, 2  ;;  %s423_s22 = scalar_lea.sflag [#allocation4], %s422_s20 }
 0x306   : > { %p522_p2 = pnand %p877_p10, %p876_p7 }
 0x308   : > { %640 = dma.done.wait (!%p522_p2), %s423_s22, 256  }
 0x309   : > { %642 = vsyncadd (!%p522_p2), %s423_s22, 4294967040  ;;  %p17_p4 = scmp.ge.s32.totalorder %s713_s21, 4   ;;  %s878_s15 = smov %s649_s16 }
 0x30a   : > { %s879_s16 = smov %s653_s17  ;;  %s880_s17 = smov %s725_s24 }
 0x30b   : > { %s881_s18 = smov %s713_s21  ;;  %19 = sbr.rel (!%p17_p4) target bundleno = 5 (0x5), region = 81 }
 0x312   :  { %428 = vsyncpa [#allocation3], 1 }
 0x313   :  { %430 = vsyncpa [#allocation3 + $0x1], 1 }
 0x314   :  { %431 = vsyncpa [#allocation4], 1 }
 0x315   :  { %433 = vsyncpa [#allocation4 + $0x1], 1 }

</bundles_post_ra>
